<compile_context>
chip_gen: v5e
topology: v5e:2x2
jax: 0.10.0
libtpu: 0.0.40
codegen_flags: <defaults>
</compile_context>

<pallas_src>
import functools

import jax
import jax.numpy as jnp
import numpy as np
from jax import lax
from jax.experimental import pallas as pl
from jax.experimental.pallas import tpu as pltpu

NUM_LOSSES = 5
LANE = 128      # lane width of one vreg
SUBLANE = 8     # sublane count of one vreg

# rows inside the packed (8, 128) state tile
ROW_ALPHAS = 0
ROW_MEAN_L = 1
ROW_MEAN_l = 2
ROW_S_l = 3
ROW_STD_l = 4


def _cov_kernel(it_ref,         # SMEM (1,)     int32 : previous current_iter
                L_ref,          # VMEM (1,128)  f32   : zero-padded loss row
                state_ref,      # VMEM (8,128)  f32   : packed running stats
                loss_ref,       # SMEM (1,)     f32   : weighted loss   (out)
                it_out_ref,     # SMEM (1,)     int32 : updated iter    (out)
                state_out_ref,  # VMEM (8,128)  f32   : updated state   (out, aliased)
                *, num_losses, mean_decay, decay_param):
    lane = lax.broadcasted_iota(jnp.int32, (1, LANE), 1)
    mask = lane < num_losses

    # loss row arrives already zero-padded to the full lane width
    L = L_ref[...]

    t = it_ref[0] + 1            # self.current_iter += 1
    it_out_ref[0] = t
    t_f = t.astype(jnp.float32)
    # scalar reciprocal, depends only on t -> off the vector critical path
    inv_t1 = 1.0 / (t_f + 1.0)

    st = state_ref[...]
    mean_L = st[ROW_MEAN_L:ROW_MEAN_L + 1, :]
    mean_l = st[ROW_MEAN_l:ROW_MEAN_l + 1, :]
    S_l = st[ROW_S_l:ROW_S_l + 1, :]
    std_l = st[ROW_STD_l:ROW_STD_l + 1, :]

    # l = L / L0 ; L0 = L at iter 0, else running_mean_L
    L0 = jnp.where(t == 0, L, mean_L)
    l = jnp.where(mask, L / jnp.where(mask, L0, 1.0), 0.0)

    # alphas: uniform for the first two iterations, CoV weights afterwards.
    # Denominators are guarded so the discarded (t <= 1) branch never forms
    # Inf/NaN; for t > 1 the math matches the PyTorch reference (including its
    # potential division-by-zero behaviour).
    uniform = jnp.where(mask, jnp.float32(1.0 / num_losses), 0.0)
    safe_mean_l = jnp.where(mask & (t > 1), mean_l, 1.0)
    ls = jnp.where(mask, std_l / safe_mean_l, 0.0)
    sum_ls = jnp.sum(ls)
    inv_sum = 1.0 / jnp.where(t > 1, sum_ls, 1.0)   # single scalar reciprocal
    cov_alphas = jnp.where(mask, ls * inv_sum, 0.0)
    alphas = jnp.where(t <= 1, uniform, cov_alphas)

    # mean_param
    if mean_decay:
        mp_pos = jnp.float32(decay_param)
    else:
        mp_pos = 1.0 - inv_t1
    mean_param = jnp.where(t == 0, jnp.float32(0.0), mp_pos)

    # Welford-style running statistics of the loss ratios l
    new_mean_l = mean_param * mean_l + (1.0 - mean_param) * l
    new_S_l = S_l + (l - mean_l) * (l - new_mean_l)
    var_l = new_S_l * inv_t1
    new_std_l = jnp.where(mask, jnp.sqrt(var_l + 1e-8), 0.0)

    # running mean of the raw losses (L is zero-padded -> pad lanes stay 0)
    new_mean_L = mean_param * mean_L + (1.0 - mean_param) * L

    # weighted loss = sum_i alphas[i] * L[i]  (both zero outside the mask)
    loss_ref[0] = jnp.sum(alphas * L)
    # TODO(synk): torch code does print(self.alphas); omitted (pl.debug_print possible)

    # single full-tile store; padding rows 5-7 carried from the input
    new_st = jnp.concatenate(
        [alphas, new_mean_L, new_mean_l, new_S_l, new_std_l,
         st[ROW_STD_l + 1:, :]],
        axis=0)
    state_out_ref[...] = new_st


def init_state():
    return {
        "current_iter": jnp.int32(-1),
        "packed": jnp.zeros((SUBLANE, LANE), jnp.float32),
    }


@functools.partial(jax.jit,
                   static_argnames=("training", "mean_decay", "mean_decay_param"))
def cov_weighting_loss(unweighted_losses, state, *, training=True,
                       mean_decay=False, mean_decay_param=1.0):
    """Functional equivalent of CoVWeightingLoss.forward.

    Returns (loss_scalar, new_state)."""
    losses = jnp.asarray(unweighted_losses, jnp.float32).reshape(-1)
    assert losses.shape[0] == NUM_LOSSES

    if not training:
        # eval: plain XLA sum, no kernel launch, state untouched
        return jnp.sum(losses), state

    it = jnp.asarray(state["current_iter"], jnp.int32).reshape((1,))

    # pre-padded (1, 128) lane row; the pad/scatter fuses with loss producers
    L_row = jnp.zeros((1, LANE), jnp.float32).at[0, :NUM_LOSSES].set(losses)

    kernel = functools.partial(
        _cov_kernel,
        num_losses=NUM_LOSSES,
        mean_decay=mean_decay,
        decay_param=float(mean_decay_param),
    )

    smem = pl.BlockSpec(memory_space=pltpu.MemorySpace.SMEM)
    vmem = pl.BlockSpec(memory_space=pltpu.MemorySpace.VMEM)

    loss, new_it, new_packed = pl.pallas_call(
        kernel,
        out_shape=(
            jax.ShapeDtypeStruct((1,), jnp.float32),             # weighted loss
            jax.ShapeDtypeStruct((1,), jnp.int32),               # new iter counter
            jax.ShapeDtypeStruct((SUBLANE, LANE), jnp.float32),  # packed state
        ),
        in_specs=[smem, vmem, vmem],
        out_specs=(smem, smem, vmem),
        input_output_aliases={2: 2},   # packed state updated in place
        cost_estimate=pl.CostEstimate(
            flops=2048,                # a handful of (1,128) VPU ops
            transcendentals=8,         # 2 vector divides + sqrt + 2 scalar recips
            bytes_accessed=2 * SUBLANE * LANE * 4 + LANE * 4 + 16),
    )(it, L_row, state["packed"])

    new_state = {"current_iter": new_it[0], "packed": new_packed}
    return loss[0], new_state


# ----------------------------------------------------------------------------
# Pure-numpy reference (mirrors the PyTorch forward exactly) for verification.
# ----------------------------------------------------------------------------
def _ref_step(L, st, *, mean_decay=False, decay_param=1.0):
    L = np.asarray(L, np.float32)
    it = st["iter"] + 1
    L0 = L.copy() if it == 0 else st["mean_L"]
    l = L / L0
    if it <= 1:
        alphas = np.ones_like(L) / len(L)
    else:
        ls = st["std_l"] / st["mean_l"]
        alphas = ls / ls.sum()
    if it == 0:
        mp = 0.0
    elif mean_decay:
        mp = decay_param
    else:
        mp = 1.0 - 1.0 / (it + 1)
    new_mean_l = mp * st["mean_l"] + (1 - mp) * l
    S_l = st["S_l"] + (l - st["mean_l"]) * (l - new_mean_l)
    std_l = np.sqrt(S_l / (it + 1) + 1e-8)
    mean_L = mp * st["mean_L"] + (1 - mp) * L
    loss = float((alphas * L).sum())
    return loss, {"iter": it, "mean_L": mean_L, "mean_l": new_mean_l,
                  "S_l": S_l, "std_l": std_l}


if __name__ == "__main__":
    key = jax.random.PRNGKey(0)
    n_steps = 4

    state = init_state()
    ref_state = {"iter": -1,
                 "mean_L": np.zeros(NUM_LOSSES, np.float32),
                 "mean_l": np.zeros(NUM_LOSSES, np.float32),
                 "S_l": np.zeros(NUM_LOSSES, np.float32),
                 "std_l": np.zeros(NUM_LOSSES, np.float32)}

    for step in range(n_steps):
        key, sub = jax.random.split(key)
        # the module's forward implies a list of num_losses scalar loss values
        losses = jax.random.uniform(sub, (NUM_LOSSES,), jnp.float32,
                                    minval=0.5, maxval=2.0)
        loss, state = cov_weighting_loss(losses, state, training=True)
        loss = jax.block_until_ready(loss)

        ref_loss, ref_state = _ref_step(np.asarray(losses), ref_state)
        packed = np.asarray(state["packed"])
        np.testing.assert_allclose(float(loss), ref_loss, rtol=1e-5, atol=1e-6)
        np.testing.assert_allclose(packed[ROW_MEAN_L, :NUM_LOSSES],
                                   ref_state["mean_L"], rtol=1e-5, atol=1e-6)
        np.testing.assert_allclose(packed[ROW_MEAN_l, :NUM_LOSSES],
                                   ref_state["mean_l"], rtol=1e-5, atol=1e-6)
        np.testing.assert_allclose(packed[ROW_STD_l, :NUM_LOSSES],
                                   ref_state["std_l"], rtol=1e-5, atol=1e-6)
        assert int(state["current_iter"]) == ref_state["iter"]
        # padding rows must stay zero
        np.testing.assert_allclose(packed[ROW_STD_l + 1:, :], 0.0)

    # eval path: plain XLA sum, state untouched, no kernel launch
    key, sub = jax.random.split(key)
    losses = jax.random.uniform(sub, (NUM_LOSSES,), jnp.float32,
                                minval=0.5, maxval=2.0)
    eval_loss, eval_state = cov_weighting_loss(losses, state, training=False)
    np.testing.assert_allclose(float(jax.block_until_ready(eval_loss)),
                               float(np.asarray(losses).sum()),
                               rtol=1e-6, atol=1e-6)
    assert int(eval_state["current_iter"]) == int(state["current_iter"])

    jax.block_until_ready(state["packed"])
    print("KERNEL_OK")
</pallas_src>

<mosaic_0001>
module attributes {stable_mosaic.version = 11 : i64} {
  func.func @_cov_kernel(%arg0: memref<1xi32, #tpu.memory_space<smem>>, %arg1: memref<1x128xf32, #tpu.memory_space<vmem>>, %arg2: memref<8x128xf32, #tpu.memory_space<vmem>>, %arg3: memref<1xf32, #tpu.memory_space<smem>>, %arg4: memref<1xi32, #tpu.memory_space<smem>>, %arg5: memref<8x128xf32, #tpu.memory_space<vmem>>) attributes {dimension_semantics = [], scalar_prefetch = 0 : i64, scratch_operands = 0 : i64, tpu.core_type = #tpu.core_type<tc>} {
    %0 = tpu.iota {dimensions = array<i32: 1>} : vector<1x128xi32>
    %c5_i32 = arith.constant 5 : i32
    %1 = vector.broadcast %c5_i32 : i32 to vector<1x128xi32>
    %2 = arith.cmpi slt, %0, %1 : vector<1x128xi32>
    %c0 = arith.constant 0 : index
    %c0_0 = arith.constant 0 : index
    %3 = vector.load %arg1[%c0, %c0_0] : memref<1x128xf32, #tpu.memory_space<vmem>>, vector<1x128xf32>
    %c0_1 = arith.constant 0 : index
    %4 = memref.load %arg0[%c0_1] : memref<1xi32, #tpu.memory_space<smem>>
    %c1_i32 = arith.constant 1 : i32
    %5 = arith.addi %4, %c1_i32 : i32
    %c0_2 = arith.constant 0 : index
    %6 = memref.load %arg4[%c0_2] : memref<1xi32, #tpu.memory_space<smem>>
    memref.store %5, %arg4[%c0_2] : memref<1xi32, #tpu.memory_space<smem>>
    %7 = arith.sitofp %5 : i32 to f32
    %cst = arith.constant 1.000000e+00 : f32
    %8 = arith.addf %7, %cst : f32
    %cst_3 = arith.constant 1.000000e+00 : f32
    %9 = arith.divf %cst_3, %8 : f32
    %c0_4 = arith.constant 0 : index
    %c0_5 = arith.constant 0 : index
    %10 = vector.load %arg2[%c0_4, %c0_5] : memref<8x128xf32, #tpu.memory_space<vmem>>, vector<8x128xf32>
    %11 = vector.extract_strided_slice %10 {offsets = [1, 0], sizes = [1, 128], strides = [1, 1]} : vector<8x128xf32> to vector<1x128xf32>
    %12 = vector.extract_strided_slice %10 {offsets = [2, 0], sizes = [1, 128], strides = [1, 1]} : vector<8x128xf32> to vector<1x128xf32>
    %13 = vector.extract_strided_slice %10 {offsets = [3, 0], sizes = [1, 128], strides = [1, 1]} : vector<8x128xf32> to vector<1x128xf32>
    %14 = vector.extract_strided_slice %10 {offsets = [4, 0], sizes = [1, 128], strides = [1, 1]} : vector<8x128xf32> to vector<1x128xf32>
    %c0_i32 = arith.constant 0 : i32
    %15 = arith.cmpi eq, %5, %c0_i32 : i32
    %16 = arith.select %15, %3, %11 : vector<1x128xf32>
    %cst_6 = arith.constant 1.000000e+00 : f32
    %17 = vector.broadcast %cst_6 : f32 to vector<1x128xf32>
    %18 = arith.select %2, %16, %17 : vector<1x128xi1>, vector<1x128xf32>
    %19 = arith.divf %3, %18 : vector<1x128xf32>
    %cst_7 = arith.constant 0.000000e+00 : f32
    %20 = vector.broadcast %cst_7 : f32 to vector<1x128xf32>
    %21 = arith.select %2, %19, %20 : vector<1x128xi1>, vector<1x128xf32>
    %cst_8 = arith.constant 2.000000e-01 : f32
    %cst_9 = arith.constant 0.000000e+00 : f32
    %22 = vector.broadcast %cst_8 : f32 to vector<1x128xf32>
    %23 = vector.broadcast %cst_9 : f32 to vector<1x128xf32>
    %24 = arith.select %2, %22, %23 : vector<1x128xi1>, vector<1x128xf32>
    %c1_i32_10 = arith.constant 1 : i32
    %25 = arith.cmpi sgt, %5, %c1_i32_10 : i32
    %26 = vector.broadcast %25 : i1 to vector<1x128xi1>
    %27 = arith.andi %2, %26 : vector<1x128xi1>
    %cst_11 = arith.constant 1.000000e+00 : f32
    %28 = vector.broadcast %cst_11 : f32 to vector<1x128xf32>
    %29 = arith.select %27, %12, %28 : vector<1x128xi1>, vector<1x128xf32>
    %30 = arith.divf %14, %29 : vector<1x128xf32>
    %cst_12 = arith.constant 0.000000e+00 : f32
    %31 = vector.broadcast %cst_12 : f32 to vector<1x128xf32>
    %32 = arith.select %2, %30, %31 : vector<1x128xi1>, vector<1x128xf32>
    %33 = vector.shape_cast %32 : vector<1x128xf32> to vector<1x1x128xf32>
    %cst_13 = arith.constant dense<0.000000e+00> : vector<1xf32>
    %34 = vector.multi_reduction <add>, %33, %cst_13 [1, 2] : vector<1x1x128xf32> to vector<1xf32>
    %35 = vector.shape_cast %34 : vector<1xf32> to vector<1x1x1xf32>
    %36 = vector.extract %35[0, 0, 0] : f32 from vector<1x1x1xf32>
    %c1_i32_14 = arith.constant 1 : i32
    %37 = arith.cmpi sgt, %5, %c1_i32_14 : i32
    %cst_15 = arith.constant 1.000000e+00 : f32
    %38 = arith.select %37, %36, %cst_15 : f32
    %cst_16 = arith.constant 1.000000e+00 : f32
    %39 = arith.divf %cst_16, %38 : f32
    %40 = vector.broadcast %39 : f32 to vector<1x128xf32>
    %41 = arith.mulf %32, %40 : vector<1x128xf32>
    %cst_17 = arith.constant 0.000000e+00 : f32
    %42 = vector.broadcast %cst_17 : f32 to vector<1x128xf32>
    %43 = arith.select %2, %41, %42 : vector<1x128xi1>, vector<1x128xf32>
    %c1_i32_18 = arith.constant 1 : i32
    %44 = arith.cmpi sle, %5, %c1_i32_18 : i32
    %45 = arith.select %44, %24, %43 : vector<1x128xf32>
    %cst_19 = arith.constant 1.000000e+00 : f32
    %46 = arith.subf %cst_19, %9 : f32
    %c0_i32_20 = arith.constant 0 : i32
    %47 = arith.cmpi eq, %5, %c0_i32_20 : i32
    %cst_21 = arith.constant 0.000000e+00 : f32
    %48 = arith.select %47, %cst_21, %46 : f32
    %49 = vector.broadcast %48 : f32 to vector<1x128xf32>
    %50 = arith.mulf %49, %12 : vector<1x128xf32>
    %cst_22 = arith.constant 1.000000e+00 : f32
    %51 = arith.subf %cst_22, %48 : f32
    %52 = vector.broadcast %51 : f32 to vector<1x128xf32>
    %53 = arith.mulf %52, %21 : vector<1x128xf32>
    %54 = arith.addf %50, %53 : vector<1x128xf32>
    %55 = arith.subf %21, %12 : vector<1x128xf32>
    %56 = arith.subf %21, %54 : vector<1x128xf32>
    %57 = arith.mulf %55, %56 : vector<1x128xf32>
    %58 = arith.addf %13, %57 : vector<1x128xf32>
    %59 = vector.broadcast %9 : f32 to vector<1x128xf32>
    %60 = arith.mulf %58, %59 : vector<1x128xf32>
    %cst_23 = arith.constant 9.99999993E-9 : f32
    %61 = vector.broadcast %cst_23 : f32 to vector<1x128xf32>
    %62 = arith.addf %60, %61 : vector<1x128xf32>
    %63 = math.sqrt %62 : vector<1x128xf32>
    %cst_24 = arith.constant 0.000000e+00 : f32
    %64 = vector.broadcast %cst_24 : f32 to vector<1x128xf32>
    %65 = arith.select %2, %63, %64 : vector<1x128xi1>, vector<1x128xf32>
    %66 = vector.broadcast %48 : f32 to vector<1x128xf32>
    %67 = arith.mulf %66, %11 : vector<1x128xf32>
    %cst_25 = arith.constant 1.000000e+00 : f32
    %68 = arith.subf %cst_25, %48 : f32
    %69 = vector.broadcast %68 : f32 to vector<1x128xf32>
    %70 = arith.mulf %69, %3 : vector<1x128xf32>
    %71 = arith.addf %67, %70 : vector<1x128xf32>
    %72 = arith.mulf %45, %3 : vector<1x128xf32>
    %73 = vector.shape_cast %72 : vector<1x128xf32> to vector<1x1x128xf32>
    %cst_26 = arith.constant dense<0.000000e+00> : vector<1xf32>
    %74 = vector.multi_reduction <add>, %73, %cst_26 [1, 2] : vector<1x1x128xf32> to vector<1xf32>
    %75 = vector.shape_cast %74 : vector<1xf32> to vector<1x1x1xf32>
    %76 = vector.extract %75[0, 0, 0] : f32 from vector<1x1x1xf32>
    %c0_27 = arith.constant 0 : index
    %77 = memref.load %arg3[%c0_27] : memref<1xf32, #tpu.memory_space<smem>>
    memref.store %76, %arg3[%c0_27] : memref<1xf32, #tpu.memory_space<smem>>
    %78 = vector.extract_strided_slice %10 {offsets = [5, 0], sizes = [3, 128], strides = [1, 1]} : vector<8x128xf32> to vector<3x128xf32>
    %79 = tpu.concatenate %45, %71, %54, %58, %65, %78 in 0 : vector<1x128xf32>, vector<1x128xf32>, vector<1x128xf32>, vector<1x128xf32>, vector<1x128xf32>, vector<3x128xf32> -> vector<8x128xf32>
    %c0_28 = arith.constant 0 : index
    %c0_29 = arith.constant 0 : index
    %80 = vector.load %arg5[%c0_28, %c0_29] : memref<8x128xf32, #tpu.memory_space<vmem>>, vector<8x128xf32>
    tpu.vector_store %arg5[%c0_28, %c0_29], %79 {strides = array<i32>} : memref<8x128xf32, #tpu.memory_space<vmem>>, vector<8x128xf32>,
    return
  }
}

</mosaic_0001>

<bundles_post_ra>
// kernel: cov_weighting_loss.1
= control target key start
LH: loop header
LB: loop body
LE: loop exit
PB: predicated region body
PF: predicated region fallthrough
CT: control target
= control target key end

     0   :  { %12 = vsyncpa [#allocation4], 0  ;;  %v20_v0 = vlaneseq  ;;  %s416_s0 = inlined_call_operand.<no memory space> [shape: s32[1], index: 0, kind: input, shape index: {}]   ;;  %s417_s1 = inlined_call_operand.vmem [shape: f32[1,128], index: 1, kind: input, shape index: {}]   ;;  %s418_s2 = inlined_call_operand.vmem [shape: f32[8,128], index: 2, kind: input, shape index: {}, may-alias: {2,5}]   ;;  %s419_s3 = inlined_call_operand.hbm [shape: f32[1], index: 3, kind: output, shape index: {0}]   ;;  %s420_s4 = inlined_call_operand.hbm [shape: s32[1], index: 4, kind: output, shape index: {1}]   ;;  %s421_s5 = inlined_call_operand.vmem [shape: f32[8,128], index: 5, kind: output, shape index: {2}, may-alias: {2,5}]  }
   0x1   :  { %s337_s20 = sadd.s32 1, %s416_s0  ;;  %v342_v1 = vld [vmem:[%s418_s2] sm:$0xff] }
   0x2   :  { %13 = vsyncpa [#allocation6], 0  ;;  %52 = vst [vmem:[#allocation1] sm:$0xff] %v342_v1  ;;  %p75_p0 = scmp.gt.s32.totalorder %s337_s20, 1  ;;  %s28_s23 = scvt.s32.f32 %s337_s20  ;;  %v347_v2 = vand.u32 127, %v20_v0  ;;  %vm103_vm11 = vcmask 1040384  }
   0x3   :  { %27 = sst [smem:[#allocation5]] %s337_s20  ;;  %p47_p1 = scmp.eq.s32.totalorder %s337_s20, 0  ;;  %v369_v39 = vld [vmem:[%s417_s1] sm:$0x1]  ;;  %v150_v62 = vrot.slane %v342_v1, 2 }
   0x4   :  { %s76_s0 = scalar_select %p75_p0, 1, 0  ;;  %vm22_vm0 = vcmp.lt.s32.totalorder %v347_v2, 5 }
   0x5   :  { %s29_s24 = sadd.f32 1.0, %s28_s23  ;;  %p134_p2 = scmp.le.s32.totalorder %s337_s20, 1 }
   0x6   :  { %v77_v3 = vstv %s76_s0  ;;  %s48_s2 = scalar_select %p47_p1, 1, 0 }
   0x7   :  { %vm78_vm1 = vcmp.eq.s32.totalorder %v77_v3, 1  ;;  %v30_v4 = vstv %s29_s24  ;;  %s135_s6 = scalar_select %p134_p2, 1, 0 }
   0x8   :  { %vm79_vm2 = vmand %vm22_vm0, %vm78_vm1  ;;  %263 = vrcp.f32 %v30_v4  ;;  %v40_v9 = vand.u32 2147483647, %v30_v4  ;;  %v42_v10 = vand.u32 2147483648, %v30_v4  ;;  %vm36_vm3 = vweird.f32 %v30_v4  ;;  %s232_s13 = sshll.u32 %s420_s4, 4  ;;  %s302_s14 = smov [#allocation5]   ;;  %s233_s13 = int_to_ptr.hbm [resolvable:$true] %s232_s13 }
   0x9   :  { %v80_v5 = vsel %vm79_vm2, %v342_v1, 1.0  ;;  %v49_v37 = vstv %s48_s2  ;;  %v54_v40 = vld [vmem:[#allocation1 + $0x1] ss:$9 sm:$0xff]  ;;  %235 = dma.smem_to_hbm %s302_s14, 16, %s233_s13, [#allocation6]  }
   0xa   :  { %v82_v6 = vrot.slane %v80_v5, 6  ;;  %vm41_vm7 = vcmp.eq.f32.partialorder %v40_v9, 8.507059e+37  ;;  %v43_v16 = vor.u32 1.1754944e-38, %v42_v10  ;;  %vm50_vm12 = vcmp.eq.s32.totalorder %v49_v37, 1  ;;  %v262_v37 = vld [vmem:[%s417_s1] ss:$0 sm:$0xff] }
   0xb   :  { %v56_v41 = vsel %vm50_vm12, %v369_v39, %v54_v40  ;;  %vm213_vm12 = vcmask 1043456   ;;  %s223_s17 = sshll.u32 %s419_s3, 4  ;;  %s303_s18 = smov [#allocation3]   ;;  %s224_s17 = int_to_ptr.hbm [resolvable:$true] %s223_s17 }
   0xc   :  { %265 = vrcp.f32 %v82_v6  ;;  %vm89_vm5 = vweird.f32 %v82_v6  ;;  %v95_v15 = vand.u32 2147483648, %v82_v6  ;;  %v93_v18 = vand.u32 2147483647, %v82_v6 }
   0xd   :  { %v57_v42 = vsel %vm22_vm0, %v56_v41, 1.0 }
   0xe   :  { %v264_v7 = vpop.eup %263  ;;  %v96_v22 = vor.u32 1.1754944e-38, %v95_v15  ;;  %vm94_vm10 = vcmp.eq.f32.partialorder %v93_v18, 8.507059e+37  ;;  %267 = vrcp.f32 %v57_v42  ;;  %vm63_vm13 = vweird.f32 %v57_v42 }
   0xf   :  { %v32_v8 = vmul.f32 %v264_v7, %v30_v4  ;;  %vm37_vm4 = vweird.f32 %v264_v7  ;;  %v69_v47 = vand.u32 2147483648, %v57_v42  ;;  %v67_v49 = vand.u32 2147483647, %v57_v42 }
  0x10   :  { %vm38_vm6 = vmor %vm36_vm3, %vm37_vm4 }
  0x11   :  { %v33_v11 = vsub.f32 1.0, %v32_v8  ;;  %v70_v50 = vor.u32 1.1754944e-38, %v69_v47  ;;  %vm68_vm1 = vcmp.eq.f32.partialorder %v67_v49, 8.507059e+37 }
  0x12   :  { %v266_v12 = vpop.eup %265 }
  0x13   :  { %v85_v13 = vmul.f32 %v266_v12, %v82_v6  ;;  %v34_v14 = vmul.f32 %v264_v7, %v33_v11  ;;  %vm90_vm8 = vweird.f32 %v266_v12 }
  0x14   :  { %vm91_vm9 = vmor %vm89_vm5, %vm90_vm8  ;;  %v268_v43 = vpop.eup %267 }
  0x15   :  { %v86_v17 = vsub.f32 1.0, %v85_v13  ;;  %v35_v19 = vadd.f32 %v264_v7, %v34_v14  ;;  %v59_v44 = vmul.f32 %v268_v43, %v57_v42  ;;  %vm64_vm14 = vweird.f32 %v268_v43 }
  0x16   :  { %vm65_vm15 = vmor %vm63_vm13, %vm64_vm14  ;;  %vm215_vm13 = vcmask 1044480  }
  0x17   :  { %v87_v20 = vmul.f32 %v266_v12, %v86_v17  ;;  %v39_v21 = vsel %vm38_vm6, %v264_v7, %v35_v19  ;;  %v60_v45 = vsub.f32 1.0, %v59_v44 }
  0x18   :  { %v44_v23 = vsel %vm41_vm7, %v43_v16, %v39_v21 }
  0x19   :  { %v88_v24 = vadd.f32 %v266_v12, %v87_v20  ;;  %251 = vpush %v44_v23  ;;  %v61_v46 = vmul.f32 %v268_v43, %v60_v45 }
  0x1b   :  { %v92_v25 = vsel %vm91_vm9, %v266_v12, %v88_v24  ;;  %v62_v48 = vadd.f32 %v268_v43, %v61_v46  ;;  %vm209_vm9 = vcmask 1041408  }
  0x1c   :  { %v97_v26 = vsel %vm94_vm10, %v96_v22, %v92_v25  ;;  %vm211_vm10 = vcmask 1042432  }
  0x1d   :  { %v98_v27 = vmul.f32 %v97_v26, %v342_v1  ;;  %v66_v51 = vsel %vm65_vm15, %v268_v43, %v62_v48 }
  0x1e   :  { %v71_v52 = vsel %vm68_vm1, %v70_v50, %v66_v51 }
  0x1f   :  { %v359_v28 = vsel %vm22_vm0, %v98_v27, 0.0  ;;  %v72_v53 = vmul.f32 %v71_v52, %v369_v39 }
  0x20   :  { %v101_v29 = vrot.slane %v359_v28, 4 }
  0x21   :  { %v73_v54 = vsel %vm22_vm0, %v72_v53, 0.0 }
  0x22   :  { %v104_v30 = vsel %vm103_vm11, %v101_v29, 0.0  ;;  %v152_v4 = vsub.f32 %v73_v54, %v150_v62  ;;  %v136_v29 = vstv %s135_s6 }
  0x23   :  { %105 = vadd.xlane.f32.xlu0 %v104_v30  ;;  %vm137_vm8 = vcmp.eq.s32.totalorder %v136_v29, 1 }
  0x4a   :  { %s374_s27 = spop %251 }
  0x4b   :  { %s139_s28 = ssub.f32 1.0, %s374_s27  ;;  %v162_v17 = vstv %s374_s27 }
  0x4d   :  { %s423_s28 = smov (%p47_p1, %s139_s28), 0.0 }
  0x4e   :  { %s143_s29 = ssub.f32 1.0, %s423_s28  ;;  %v141_v57 = vstv %s423_s28 }
  0x4f   :  { %v142_v58 = vmul.f32 %v141_v57, %v342_v1 }
  0x50   :  { %v144_v55 = vstv %s143_s29 }
  0x51   :  { %v145_v56 = vmul.f32 %v144_v55, %v73_v54  ;;  %v178_v27 = vmul.f32 %v144_v55, %v369_v39 }
  0x53   :  { %v147_v59 = vrot.slane %v145_v56, 6 }
  0x55   :  { %v385_v61 = vadd.f32 %v147_v59, %v142_v58 }
  0x57   :  { %v154_v63 = vrot.slane %v385_v61, 2 }
  0x59   :  { %v156_v5 = vsub.f32 %v73_v54, %v154_v63 }
  0x5b   :  { %v157_v10 = vmul.f32 %v156_v5, %v152_v4 }
  0x5d   :  { %v159_v15 = vrot.slane %v157_v10, 5 }
  0x5f   :  { %v161_v16 = vadd.f32 %v159_v15, %v342_v1 }
  0x61   :  { %v163_v18 = vmul.f32 %v162_v17, %v161_v16 }
  0x63   :  { %v164_v19 = vadd.f32 1e-08, %v163_v18 }
  0x65   :  { %vm172_vm6 = vcmp.eq.f32.partialorder %v164_v19, inf  ;;  %v175_v30 = vand.u32 2147483648, %v164_v19  ;;  %vm174_vm7 = vcmp.eq.f32.partialorder %v164_v19, 0.0 }
  0x96   :  { %v106_v31 = vpop.xlane.xlu0 %105 }
  0x97   :  { %v107_v32 = vrot.slane %v106_v31, 4 }
  0x99   :  { %v108_v33 = vadd.f32 %v107_v32, %v106_v31  ;;  %v180_v32 = vperm.slane %v178_v27, 0 }
  0x9b   :  { %v109_v34 = vrot.slane %v108_v33, 2  ;;  %v182_v40 = vadd.f32 %v180_v32, %v142_v58 }
  0x9d   :  { %v110_v35 = vadd.f32 %v109_v34, %v108_v33 }
  0x9f   :  { %v111_v36 = vrot.slane %v110_v35, 1 }
  0xa1   :  { %v112_v38 = vadd.f32 %v111_v36, %v110_v35  ;;  %v301_v35 = vmov 0.0  }
  0xa2   :  { %v74_v36 = vsel %vm22_vm0, 0.2, %v301_v35 }
  0xa3   :  { %253 = vpush %v112_v38 }
  0xd4   :  { %s254_s30 = spop %253 }
  0xd5   :  { %s425_s30 = smov (!%p75_p0, %s254_s30), 1.0 }
  0xd6   :  { %v115_v60 = vstv %s425_s30 }
  0xd7   :  { %269 = vrcp.f32 %v115_v60  ;;  %v127_v7 = vand.u32 2147483648, %v115_v60  ;;  %v125_v9 = vand.u32 2147483647, %v115_v60  ;;  %vm121_vm3 = vweird.f32 %v115_v60 }
  0xd8   :  { %271 = vrsqrt.f32 %v164_v19 }
  0xd9   :  { %v128_v12 = vor.u32 1.1754944e-38, %v127_v7  ;;  %vm126_vm5 = vcmp.eq.f32.partialorder %v125_v9, 8.507059e+37 }
  0xdd   :  { %v270_v0 = vpop.eup %269 }
  0xde   :  { %v117_v3 = vmul.f32 %v270_v0, %v115_v60  ;;  %vm122_vm2 = vweird.f32 %v270_v0  ;;  %v272_v20 = vpop.eup %271 }
  0xdf   :  { %vm123_vm4 = vmor %vm121_vm3, %vm122_vm2  ;;  %v166_v21 = vmul.f32 %v272_v20, %v164_v19 }
  0xe0   :  { %v118_v6 = vsub.f32 1.0, %v117_v3 }
  0xe1   :  { %v167_v22 = vmul.f32 %v272_v20, %v166_v21 }
  0xe2   :  { %v119_v8 = vmul.f32 %v270_v0, %v118_v6 }
  0xe3   :  { %v168_v23 = vmul.f32 0.5, %v167_v22 }
  0xe4   :  { %v120_v11 = vadd.f32 %v270_v0, %v119_v8 }
  0xe5   :  { %v169_v24 = vsub.f32 1.5, %v168_v23 }
  0xe6   :  { %v124_v13 = vsel %vm123_vm4, %v270_v0, %v120_v11 }
  0xe7   :  { %v129_v14 = vsel %vm126_vm5, %v128_v12, %v124_v13  ;;  %v170_v25 = vmul.f32 %v272_v20, %v169_v24 }
  0xe8   :  { %255 = vpush %v129_v14 }
  0xe9   :  { %v171_v26 = vmul.f32 %v170_v25, %v164_v19 }
  0xeb   :  { %v173_v31 = vsel %vm172_vm6, %v164_v19, %v171_v26 }
  0xec   :  { %v176_v38 = vsel %vm174_vm7, %v175_v30, %v173_v31 }
 0x119   :  { %s256_s7 = spop %255 }
 0x11a   :  { %v131_v33 = vstv %s256_s7 }
 0x11b   :  { %v132_v34 = vmul.f32 %v131_v33, %v359_v28  ;;  %v177_v28 = vsel %vm22_vm0, %v176_v38, 0.0 }
 0x11c   :  { %v206_v46 = vrot.slane %v177_v28, 7 }
 0x11d   :  { %v133_v39 = vsel %vm22_vm0, %v132_v34, 0.0 }
 0x11e   :  { %v138_v41 = vsel %vm137_vm8, %v74_v36, %v133_v39 }
 0x11f   :  { %v186_v42 = vmul.f32 %v262_v37, %v138_v41  ;;  %v203_v43 = vrot.slane %v138_v41, 4 }
 0x121   :  { %v188_v44 = vrot.slane %v186_v42, 4  ;;  %v208_v45 = vsel %vm103_vm11, %v203_v43, %v182_v40 }
 0x122   :  { %v210_v47 = vsel %vm209_vm9, %v208_v45, %v385_v61 }
 0x123   :  { %v190_v48 = vsel %vm103_vm11, %v188_v44, 0.0  ;;  %v212_v49 = vsel %vm211_vm10, %v210_v47, %v161_v16 }
 0x124   :  { %191 = vadd.xlane.f32.xlu0 %v190_v48  ;;  %v214_v50 = vsel %vm213_vm12, %v212_v49, %v206_v46 }
 0x125   :  { %v216_v51 = vsel %vm215_vm13, %v214_v50, %v342_v1 }
 0x126   :  { %217 = vst [vmem:[%s421_s5] sm:$0xff] %v216_v51 }
 0x197   :  { %v192_v2 = vpop.xlane.xlu0 %191 }
 0x198   :  { %v193_v52 = vrot.slane %v192_v2, 4 }
 0x19a   :  { %v194_v53 = vadd.f32 %v193_v52, %v192_v2 }
 0x19c   :  { %v195_v54 = vrot.slane %v194_v53, 2 }
 0x19e   :  { %v196_v55 = vadd.f32 %v195_v54, %v194_v53 }
 0x1a0   :  { %v197_v56 = vrot.slane %v196_v55, 1 }
 0x1a2   :  { %v198_v57 = vadd.f32 %v197_v56, %v196_v55 }
 0x1a4   :  { %257 = vpush %v198_v57 }
 0x1d5   :  { %s258_s5 = spop %257 }
 0x1d6   :  { %201 = sst [smem:[#allocation3]] %s258_s5 }
 0x1d7   :  { %226 = dma.smem_to_hbm %s303_s18, 16, %s224_s17, [#allocation4]  }
 0x1d8   :  { %297 = dma.done.wait [#allocation4], 16  }
 0x1d9   :  { %298 = vsyncadd [#allocation4], 4294967280 }
 0x1da   :  { %299 = dma.done.wait [#allocation6], 16  }
 0x1db   :  { %300 = vsyncadd [#allocation6], 4294967280 }
 0x1dc   :  { %248 = sfence }
 0x1dd   :  { %249 = vsyncpa [#allocation4], 1 }
 0x1de   :  { %250 = vsyncpa [#allocation6], 1 }

</bundles_post_ra>
